<compile_context>
chip_gen: v6e
topology: v6e:2x2x1
jax: 0.10.0
libtpu: 0.0.40
codegen_flags: <defaults>
</compile_context>

<pallas_src>
import jax
import jax.numpy as jnp
from jax import lax
from jax.experimental import pallas as pl
from jax.experimental.pallas import tpu as pltpu


def _round_up(a: int, m: int) -> int:
    return (a + m - 1) // m * m


# ---------------------------------------------------------------------------
# Path 1: whole-problem-in-VMEM fused kernel (covers the module's real shape).
# No reduction grid axis, no scratch, no padding, single fused epilogue.
# ---------------------------------------------------------------------------
def _fused_linear_kernel(x_ref, w_ref, b_ref, o_ref):
    # x:(B, IN), w:(OUT, IN); contract over IN -> (B, OUT). dot_general lets
    # the MXU consume W in its native (OUT, IN) layout (no XLU transpose).
    acc = lax.dot_general(
        x_ref[...],
        w_ref[...],
        dimension_numbers=(((1,), (1,)), ((), ())),
        preferred_element_type=jnp.float32,
    )
    # Single fused VPU epilogue: + bias - 42, cast, store.
    o_ref[...] = (acc + b_ref[...] - 42.0).astype(o_ref.dtype)


def _fused_linear(x, weight, bias2d):
    B, IN = x.shape
    OUT = weight.shape[0]
    return pl.pallas_call(
        _fused_linear_kernel,
        out_shape=jax.ShapeDtypeStruct((B, OUT), x.dtype),
        grid=(1,),
        in_specs=[
            pl.BlockSpec((B, IN), lambda i: (0, 0)),     # x, full array
            pl.BlockSpec((OUT, IN), lambda i: (0, 0)),   # W, full array (OUT, IN)
            pl.BlockSpec((1, OUT), lambda i: (0, 0)),    # bias, full array
        ],
        out_specs=pl.BlockSpec((B, OUT), lambda i: (0, 0)),
    )(x, weight, bias2d)


# ---------------------------------------------------------------------------
# Path 2: generic tiled fallback for large B / IN / OUT (not traced for the
# module's (1, 8) input). Accumulates directly into the resident f32 output
# block (no scratch); bias - 42 is added on the last K step.
# ---------------------------------------------------------------------------
def _tiled_linear_kernel(x_ref, w_ref, b_ref, o_ref):
    k = pl.program_id(2)

    @pl.when(k == 0)
    def _init():
        o_ref[...] = jnp.zeros_like(o_ref)

    o_ref[...] += lax.dot_general(
        x_ref[...],
        w_ref[...],
        dimension_numbers=(((1,), (1,)), ((), ())),
        preferred_element_type=jnp.float32,
    ).astype(o_ref.dtype)

    @pl.when(k == pl.num_programs(2) - 1)
    def _epilogue():
        o_ref[...] += (b_ref[...] - 42.0).astype(o_ref.dtype)


def _tiled_linear(x, weight, bias2d, *, tm=256, tn=256, tk=512):
    B, IN = x.shape
    OUT = weight.shape[0]

    tm = _round_up(max(8, min(tm, B)), 8)
    tn = _round_up(max(128, min(tn, OUT)), 128)
    tk = _round_up(max(128, min(tk, IN)), 128)

    B_p, IN_p, OUT_p = _round_up(B, tm), _round_up(IN, tk), _round_up(OUT, tn)
    x_p = jnp.pad(x, ((0, B_p - B), (0, IN_p - IN)))
    w_p = jnp.pad(weight, ((0, OUT_p - OUT), (0, IN_p - IN)))
    b_p = jnp.pad(bias2d, ((0, 0), (0, OUT_p - OUT)))

    grid = (B_p // tm, OUT_p // tn, IN_p // tk)
    out = pl.pallas_call(
        _tiled_linear_kernel,
        out_shape=jax.ShapeDtypeStruct((B_p, OUT_p), x.dtype),
        grid=grid,
        in_specs=[
            pl.BlockSpec((tm, tk), lambda i, j, k: (i, k)),   # x tile
            pl.BlockSpec((tn, tk), lambda i, j, k: (j, k)),   # W tile (OUT, IN)
            pl.BlockSpec((1, tn), lambda i, j, k: (0, j)),    # bias tile
        ],
        out_specs=pl.BlockSpec((tm, tn), lambda i, j, k: (i, j)),
        compiler_params=pltpu.CompilerParams(
            dimension_semantics=("parallel", "parallel", "arbitrary"),
        ),
    )(x_p, w_p, b_p)
    return out[:B, :OUT]


@jax.jit
def linear_minus_42(x, weight, bias):
    """y = x @ weight.T + bias - 42, matching torch.nn.Linear(8, 2)(x) - 42."""
    B, IN = x.shape
    OUT = weight.shape[0]
    bias2d = bias.reshape(1, OUT)

    # Whole-problem-in-VMEM path whenever operands (each padded to at most a
    # few vregs) fit comfortably; this is the path taken for (1, 8) @ (8, 2).
    approx_bytes = 4 * (B * IN + OUT * IN + B * OUT + OUT)
    if max(B, IN, OUT) <= 1024 and approx_bytes <= 8 * 1024 * 1024:
        return _fused_linear(x, weight, bias2d)
    return _tiled_linear(x, weight, bias2d)


if __name__ == "__main__":
    key = jax.random.PRNGKey(0)
    kx, kw, kb = jax.random.split(key, 3)

    # Shapes implied by the PyTorch module: x1 = randn(1, 8), Linear(8, 2).
    B, IN, OUT = 1, 8, 2

    x1 = jax.random.normal(kx, (B, IN), dtype=jnp.float32)
    weight = jax.random.normal(kw, (OUT, IN), dtype=jnp.float32) * 0.1
    bias = jax.random.normal(kb, (OUT,), dtype=jnp.float32) * 0.1

    out = jax.block_until_ready(linear_minus_42(x1, weight, bias))

    # Reference check in plain JAX.
    ref = x1 @ weight.T + bias - 42.0
    assert out.shape == (B, OUT)
    assert jnp.allclose(out, ref, atol=1e-5, rtol=1e-5)

    print("KERNEL_OK")
</pallas_src>

<mosaic_0001>
module attributes {stable_mosaic.version = 11 : i64} {
  func.func @_fused_linear_kernel(%arg0: i32, %arg1: memref<1x8xf32, #tpu.memory_space<vmem>>, %arg2: memref<2x8xf32, #tpu.memory_space<vmem>>, %arg3: memref<1x2xf32, #tpu.memory_space<vmem>>, %arg4: memref<1x2xf32, #tpu.memory_space<vmem>>) attributes {dimension_semantics = [#tpu.dimension_semantics<arbitrary>], iteration_bounds = array<i64: 1>, scalar_prefetch = 0 : i64, scratch_operands = 0 : i64, tpu.core_type = #tpu.core_type<tc>, window_params = [{pipeline_mode = #tpu.pipeline_mode<synchronous>, transform_indices = @transform_0, window_bounds = array<i64: 1, 8>}, {pipeline_mode = #tpu.pipeline_mode<synchronous>, transform_indices = @transform_1, window_bounds = array<i64: 2, 8>}, {pipeline_mode = #tpu.pipeline_mode<synchronous>, transform_indices = @transform_2, window_bounds = array<i64: 1, 2>}, {pipeline_mode = #tpu.pipeline_mode<synchronous>, transform_indices = @transform_3, window_bounds = array<i64: 1, 2>}]} {
    %c0 = arith.constant 0 : index
    %c0_0 = arith.constant 0 : index
    %0 = vector.load %arg1[%c0, %c0_0] : memref<1x8xf32, #tpu.memory_space<vmem>>, vector<1x8xf32>
    %c0_1 = arith.constant 0 : index
    %c0_2 = arith.constant 0 : index
    %1 = vector.load %arg2[%c0_1, %c0_2] : memref<2x8xf32, #tpu.memory_space<vmem>>, vector<2x8xf32>
    %cst = arith.constant dense<0.000000e+00> : vector<1x2xf32>
    %2 = tpu.matmul %0, %1, %cst {dimension_numbers = #tpu.dot_dimension_numbers<[1], [1], [0], [0], [0, 0, 1, 0], [], []>} : vector<1x8xf32>, vector<2x8xf32>, vector<1x2xf32> -> vector<1x2xf32>
    %c0_3 = arith.constant 0 : index
    %c0_4 = arith.constant 0 : index
    %3 = vector.load %arg3[%c0_3, %c0_4] : memref<1x2xf32, #tpu.memory_space<vmem>>, vector<1x2xf32>
    %4 = arith.addf %2, %3 : vector<1x2xf32>
    %cst_5 = arith.constant 4.200000e+01 : f32
    %5 = vector.broadcast %cst_5 : f32 to vector<1x2xf32>
    %6 = arith.subf %4, %5 : vector<1x2xf32>
    %c0_6 = arith.constant 0 : index
    %c0_7 = arith.constant 0 : index
    %7 = vector.load %arg4[%c0_6, %c0_7] : memref<1x2xf32, #tpu.memory_space<vmem>>, vector<1x2xf32>
    tpu.vector_store %arg4[%c0_6, %c0_7], %6 {strides = array<i32>} : memref<1x2xf32, #tpu.memory_space<vmem>>, vector<1x2xf32>,
    return
  }
  func.func @transform_0(%arg0: i32) -> (i32, i32) {
    %c0_i32 = arith.constant 0 : i32
    %c0_i32_0 = arith.constant 0 : i32
    %c0_i32_1 = arith.constant 0 : i32
    return %c0_i32, %c0_i32_0 : i32, i32
  }
  func.func @transform_1(%arg0: i32) -> (i32, i32) {
    %c0_i32 = arith.constant 0 : i32
    %c0_i32_0 = arith.constant 0 : i32
    %c0_i32_1 = arith.constant 0 : i32
    return %c0_i32, %c0_i32_0 : i32, i32
  }
  func.func @transform_2(%arg0: i32) -> (i32, i32) {
    %c0_i32 = arith.constant 0 : i32
    %c0_i32_0 = arith.constant 0 : i32
    %c0_i32_1 = arith.constant 0 : i32
    return %c0_i32, %c0_i32_0 : i32, i32
  }
  func.func @transform_3(%arg0: i32) -> (i32, i32) {
    %c0_i32 = arith.constant 0 : i32
    %c0_i32_0 = arith.constant 0 : i32
    %c0_i32_1 = arith.constant 0 : i32
    return %c0_i32, %c0_i32_0 : i32, i32
  }
}

</mosaic_0001>

<bundles_post_ra>
// kernel: linear_minus_42.1
= control target key start
LH: loop header
LB: loop body
LE: loop exit
PB: predicated region body
PF: predicated region fallthrough
CT: control target
= control target key end

     0   :  { %vm18_vm0 = vcmask 64512   ;;  %v147_v1 = vmov 0.0   ;;  %vm148_vm1 = vmmov 0   ;;  %s182_s0 = inlined_call_operand.vmem [shape: f32[1,8], index: 0, kind: input, shape index: {}]   ;;  %s183_s1 = inlined_call_operand.vmem [shape: f32[2,8], index: 1, kind: input, shape index: {}]   ;;  %s184_s2 = inlined_call_operand.vmem [shape: f32[1,2], index: 2, kind: input, shape index: {}]   ;;  %s185_s3 = inlined_call_operand.hbm [shape: f32[1,2], index: 3, kind: output, shape index: {}]  }
   0x1   :  { %v16_v0 = vld [vmem:[%s183_s1] sm:$0x3]  ;;  %117 = vmatprep.subr.mxu0 %v147_v1  ;;  %119 = vmatprep.mubr.msk.f32.mxu0 %vm148_vm1, %v147_v1 }
   0x2   :  { %8 = vsyncpa [#allocation3], 0  ;;  %118 = vmatpush3.xpose.msk.msra.mxu0 %vm18_vm0, %v16_v0  ;;  %v15_v2 = vld [vmem:[%s182_s0] sm:$0x1]  ;;  %s149_s18 = smov [#allocation2]   ;;  %vm96_vm2 = vcmask 8192  }
   0x3   :  { %v17_v3 = vld [vmem:[%s184_s2] sm:$0x1]  ;;  %s104_s19 = sshll.u32 %s149_s18, 4  ;;  %s105_s19 = int_to_ptr.vmem [resolvable:$true] %s104_s19 }
   0x4   :  { %s125_s1 = scalar_lea.vmem %s105_s19, 16  ;;  %s129_s20 = scalar_lea.vmem %s105_s19, 32 }
   0x5   :  { %120 = vmatmul.mubr.msk.f32.vlgmr.msra.gmra.mxu0 %vm18_vm0, %v15_v2  ;;  %p126_p0 = scmp.ne.s32.totalorder %s105_s19, %s125_s1  ;;  %p130_p1 = scmp.lt.s32.totalorder %s105_s19, %s105_s19 }
   0x6   :  { %p131_p2 = scmp.lt.s32.totalorder %s129_s20, %s125_s1 }
   0x8   :  { %p132_p3 = por %p131_p2, %p130_p1 }
   0xa   :  { %p133_p4 = pnand %p132_p3, %p126_p0 }
  0xc5   :  { %v91_v4 = vpop.f32.mrf.mxu0 }
  0xc6   :  { %v92_v5 = vadd.f32 %v91_v4, %v17_v3 }
  0xc7   :  { %v121_v6 = vpop.f32.mrf.mxu0 }
  0xc8   :  { %v114_v7 = vadd.f32 -42.0, %v92_v5 }
  0xca   :  { %97 = vst.msk [vmem:[#allocation2] sm:$0x1] %vm96_vm2, %v114_v7 }
  0xcb   :  { %136 = shalt.err (!%p133_p4)
}
  0xcc   :  { %107 = dma.vmem_to_hbm [thread:$0]  %s105_s19, 16, %s185_s3, [#allocation3]  }
  0xcd   :  { %145 = dma.done.wait [#allocation3], 16  }
  0xce   :  { %146 = vsyncadd [#allocation3], 4294967280 }
  0xcf   :  { %111 = vsyncpa [#allocation3], 1 }

</bundles_post_ra>
